<compile_context>
chip_gen: v7x
topology: tpu7x:2x2x1
jax: 0.10.0
libtpu: 0.0.40
codegen_flags: <defaults>
</compile_context>

<pallas_src>
import jax
import jax.numpy as jnp
import numpy as np
from jax.experimental import pallas as pl
from jax.experimental.pallas import tpu as pltpu


def _round_up(v, m):
    return ((v + m - 1) // m) * m


def _cdiv(a, b):
    return (a + b - 1) // b


# ----------------------------- Pallas kernel ------------------------------ #
def _fuse_conv_bn_relu_kernel(x_ref, y_ref, z_ref, w_ref, bias_ref, o_ref,
                              cat_ref):
    # x/y/z_ref: (1, Ci, ts)  f32 activation tiles (spatial on lanes)
    # w_ref:     (Cout, Cin)  bf16 BN-folded 1x1-conv weight
    # bias_ref:  (Cout, 1)    f32 folded BN bias
    # o_ref:     (1, Cout, ts) output tile (bf16 by default)
    # cat_ref:   (Cin, ts)    bf16 VMEM scratch holding the channel-concat tile
    c1 = x_ref.shape[1]
    c2 = y_ref.shape[1]
    c3 = z_ref.shape[1]

    # In-kernel cast f32 -> bf16 (VPU work, hidden under DMA) + channel concat
    # into a single contiguous K=Cin operand for the MXU.
    cat_ref[0:c1, :] = x_ref[0].astype(jnp.bfloat16)
    cat_ref[c1:c1 + c2, :] = y_ref[0].astype(jnp.bfloat16)
    cat_ref[c1 + c2:c1 + c2 + c3, :] = z_ref[0].astype(jnp.bfloat16)

    # Single K=Cin MXU matmul, f32 accumulation.
    acc = jnp.dot(w_ref[...], cat_ref[...], preferred_element_type=jnp.float32)
    out = acc + bias_ref[...]                 # (Cout, 1) broadcasts over lanes
    o_ref[0] = jnp.maximum(out, 0.0).astype(o_ref.dtype)


def fused_conv1x1_bn_relu_nchw(x, y, z, w, bias, *, ts,
                               out_dtype=jnp.bfloat16):
    """x/y/z: (N, Ci, S) f32; w: (Cout, Cin) bf16 (BN folded); bias: (Cout, 1) f32.

    Returns (N, Cout, S) in ``out_dtype``.  S does NOT need to be a multiple
    of ts: the last spatial block is partial and Pallas masks the writeback.
    """
    N, C1, S = x.shape
    C2, C3 = y.shape[1], z.shape[1]
    Cout, Cin = w.shape
    assert Cin == C1 + C2 + C3
    assert ts % 128 == 0
    out_bytes = jnp.dtype(out_dtype).itemsize
    grid = (N, _cdiv(S, ts))

    cost = pl.CostEstimate(
        flops=2 * N * S * Cin * Cout,
        transcendentals=0,
        bytes_accessed=int(N * S * Cin * 4                # f32 activations in
                           + Cin * Cout * 2               # bf16 weight
                           + Cout * 4                     # f32 bias
                           + N * S * Cout * out_bytes),   # output
    )

    # VMEM: double-buffered f32 input blocks + output block + weight/bias,
    # plus the single-buffered bf16 concat scratch.  Keep headroom for v7x.
    vmem_need = (2 * ts * (4 * Cin + out_bytes * Cout)
                 + 2 * (Cout * max(Cin, 128) * 2 + Cout * 128 * 4)
                 + Cin * ts * 2)
    vmem_limit = int(min(max(vmem_need + (4 << 20), 16 << 20), 64 << 20))

    return pl.pallas_call(
        _fuse_conv_bn_relu_kernel,
        out_shape=jax.ShapeDtypeStruct((N, Cout, S), out_dtype),
        grid_spec=pltpu.PrefetchScalarGridSpec(
            num_scalar_prefetch=0,
            grid=grid,
            in_specs=[
                pl.BlockSpec((1, C1, ts), lambda n, s: (n, 0, s)),
                pl.BlockSpec((1, C2, ts), lambda n, s: (n, 0, s)),
                pl.BlockSpec((1, C3, ts), lambda n, s: (n, 0, s)),
                pl.BlockSpec((Cout, Cin), lambda n, s: (0, 0)),
                pl.BlockSpec((Cout, 1), lambda n, s: (0, 0)),
            ],
            out_specs=pl.BlockSpec((1, Cout, ts), lambda n, s: (n, 0, s)),
            scratch_shapes=[pltpu.VMEM((Cin, ts), jnp.bfloat16)],
        ),
        compiler_params=pltpu.CompilerParams(
            dimension_semantics=("parallel", "parallel"),
            vmem_limit_bytes=vmem_limit,
        ),
        cost_estimate=cost,
    )(x, y, z, w, bias)


# ------------------------------ Module wrapper ----------------------------- #
class HighLowSemanticFusionPallas:
    def __init__(self, in_ch1, in_ch2, in_ch3, out_ch, key, eps=1e-5,
                 max_spatial_tile=4096, vmem_budget_bytes=24 << 20,
                 out_dtype=jnp.bfloat16):
        cin = in_ch1 + in_ch2 + in_ch3
        k_w, k_g, k_b, k_m, k_v = jax.random.split(key, 5)
        # Conv 1x1 weight, PyTorch layout (Cout, Cin, 1, 1) -> (Cout, Cin).
        w = jax.random.normal(k_w, (out_ch, cin), jnp.float32) * 0.05
        # BatchNorm parameters (deterministic, non-trivial).
        gamma = 1.0 + 0.1 * jax.random.normal(k_g, (out_ch,), jnp.float32)
        beta = 0.1 * jax.random.normal(k_b, (out_ch,), jnp.float32)
        running_mean = 0.1 * jax.random.normal(k_m, (out_ch,), jnp.float32)
        running_var = 1.0 + 0.1 * jax.random.uniform(k_v, (out_ch,), jnp.float32)
        scale = gamma / jnp.sqrt(running_var + eps)
        bias = beta - running_mean * scale

        # Keep un-folded f32 copies for the reference check.
        self.w_f32 = w
        self.scale_f32 = scale
        self.bias_f32 = bias

        # Fold BN scale into the conv weight (per-Cout row); single bf16 weight
        # (one DMA, lane-dense), not split per input.
        self.w_bf16 = (w * scale[:, None]).astype(jnp.bfloat16)
        self.bias = bias.reshape(out_ch, 1)          # f32
        self.out_ch = out_ch
        self.cin = cin
        self.max_spatial_tile = max_spatial_tile
        self.vmem_budget_bytes = vmem_budget_bytes
        # Output dtype: bf16 halves the largest HBM stream; pass jnp.float32
        # for exact dtype parity with the f32 PyTorch module.
        self.out_dtype = out_dtype

    def _pick_spatial_tile(self, N, S):
        out_bytes = jnp.dtype(self.out_dtype).itemsize
        # Per-spatial-column VMEM cost (double-buffered in/out + concat scratch).
        per_col = 2 * 4 * self.cin + 2 * out_bytes * self.out_ch + 2 * self.cin
        ts = min(self.max_spatial_tile, self.vmem_budget_bytes // per_col)
        ts = max(128, (ts // 128) * 128)
        ts = min(ts, _round_up(S, 128))
        # Keep >=2 grid steps when possible so both TCs on a v7x chip get work.
        if N * _cdiv(S, ts) < 2 and ts > 128:
            ts = max(128, (_cdiv(ts, 2) // 128) * 128)
        return ts

    def __call__(self, x, y, z):
        # x: (N, C1, H, W), y: (N, C2, H, W), z: (N, C3, H, W)  -- NCHW, f32
        N, C1, H, W = x.shape
        C2, C3 = y.shape[1], z.shape[1]
        S = H * W
        ts = self._pick_spatial_tile(N, S)

        # Free reshapes only: no dtype cast, no pad, no output slice.
        out = fused_conv1x1_bn_relu_nchw(
            x.reshape(N, C1, S), y.reshape(N, C2, S), z.reshape(N, C3, S),
            self.w_bf16, self.bias, ts=ts, out_dtype=self.out_dtype)
        return out.reshape(N, self.out_ch, H, W)       # NCHW, free reshape


# --------------------------------- main ------------------------------------ #
def _reference(mod, x, y, z):
    # Pure-JAX f32 reference following the PyTorch op order
    # (concat -> 1x1 conv -> BN (inference) -> ReLU).
    cat = jnp.concatenate([x, y, z], axis=1)
    N, Cin, H, W = cat.shape
    rows = jnp.transpose(cat, (0, 2, 3, 1)).reshape(-1, Cin)
    ref_rows = jnp.maximum(rows @ mod.w_f32.T * mod.scale_f32 + mod.bias_f32, 0.0)
    return jnp.transpose(ref_rows.reshape(N, H, W, mod.out_ch), (0, 3, 1, 2))


if __name__ == "__main__":
    key = jax.random.PRNGKey(0)
    k_x, k_y, k_z, k_p, k_q = jax.random.split(key, 5)

    # --- Test 1: aligned spatial size (channel ratio like 64/64/128 -> 128) ---
    N, H, W = 2, 16, 16
    in_ch1, in_ch2, in_ch3, out_ch = 32, 32, 64, 128
    x = jax.random.normal(k_x, (N, in_ch1, H, W), jnp.float32)
    y = jax.random.normal(k_y, (N, in_ch2, H, W), jnp.float32)
    z = jax.random.normal(k_z, (N, in_ch3, H, W), jnp.float32)

    mod = HighLowSemanticFusionPallas(in_ch1, in_ch2, in_ch3, out_ch, k_p)
    out = jax.block_until_ready(mod(x, y, z))
    assert out.shape == (N, out_ch, H, W)
    ref = _reference(mod, x, y, z)
    # bf16 activations/weights/output with f32 accumulation -> loose tolerance.
    np.testing.assert_allclose(np.asarray(out.astype(jnp.float32)),
                               np.asarray(ref), rtol=3e-2, atol=3e-2)

    # --- Test 2: non-128-aligned spatial size exercises the partial last
    #     block (no padding, no output slice anywhere). ---
    N2, H2, W2 = 1, 10, 30                      # S = 300 (not a multiple of 128)
    c1b, c2b, c3b, cob = 16, 16, 32, 64
    x2 = jax.random.normal(k_x, (N2, c1b, H2, W2), jnp.float32)
    y2 = jax.random.normal(k_y, (N2, c2b, H2, W2), jnp.float32)
    z2 = jax.random.normal(k_z, (N2, c3b, H2, W2), jnp.float32)
    mod2 = HighLowSemanticFusionPallas(c1b, c2b, c3b, cob, k_q,
                                       max_spatial_tile=128)
    out2 = jax.block_until_ready(mod2(x2, y2, z2))
    assert out2.shape == (N2, cob, H2, W2)
    ref2 = _reference(mod2, x2, y2, z2)
    np.testing.assert_allclose(np.asarray(out2.astype(jnp.float32)),
                               np.asarray(ref2), rtol=3e-2, atol=3e-2)

    print("KERNEL_OK")
</pallas_src>

<mosaic_0001>
module attributes {stable_mosaic.version = 11 : i64} {
  func.func @_fuse_conv_bn_relu_kernel(%arg0: i32, %arg1: i32, %arg2: memref<1x32x256xf32, #tpu.memory_space<vmem>>, %arg3: memref<1x32x256xf32, #tpu.memory_space<vmem>>, %arg4: memref<1x64x256xf32, #tpu.memory_space<vmem>>, %arg5: memref<128x128xbf16, #tpu.memory_space<vmem>>, %arg6: memref<128x1xf32, #tpu.memory_space<vmem>>, %arg7: memref<1x128x256xbf16, #tpu.memory_space<vmem>>, %arg8: memref<128x256xbf16, #tpu.memory_space<vmem>>) attributes {dimension_semantics = [#tpu.dimension_semantics<parallel>, #tpu.dimension_semantics<parallel>], iteration_bounds = array<i64: 2, 1>, scalar_prefetch = 0 : i64, scratch_operands = 1 : i64, tpu.core_type = #tpu.core_type<tc>, window_params = [{transform_indices = @transform_0, window_bounds = array<i64: 1, 32, 256>}, {transform_indices = @transform_1, window_bounds = array<i64: 1, 32, 256>}, {transform_indices = @transform_2, window_bounds = array<i64: 1, 64, 256>}, {pipeline_mode = #tpu.pipeline_mode<synchronous>, transform_indices = @transform_3, window_bounds = array<i64: 128, 128>}, {pipeline_mode = #tpu.pipeline_mode<synchronous>, transform_indices = @transform_4, window_bounds = array<i64: 128, 1>}, {transform_indices = @transform_5, window_bounds = array<i64: 1, 128, 256>}]} {
    %c0 = arith.constant 0 : index
    %c0_0 = arith.constant 0 : index
    %c0_1 = arith.constant 0 : index
    %0 = vector.load %arg2[%c0, %c0_0, %c0_1] : memref<1x32x256xf32, #tpu.memory_space<vmem>>, vector<1x32x256xf32>
    %1 = vector.shape_cast %0 : vector<1x32x256xf32> to vector<32x256xf32>
    %2 = arith.truncf %1 : vector<32x256xf32> to vector<32x256xbf16>
    %c0_2 = arith.constant 0 : index
    %c0_3 = arith.constant 0 : index
    %3 = vector.load %arg8[%c0_2, %c0_3] : memref<128x256xbf16, #tpu.memory_space<vmem>>, vector<32x256xbf16>
    tpu.vector_store %arg8[%c0_2, %c0_3], %2 {strides = array<i32>} : memref<128x256xbf16, #tpu.memory_space<vmem>>, vector<32x256xbf16>,
    %c0_4 = arith.constant 0 : index
    %c0_5 = arith.constant 0 : index
    %c0_6 = arith.constant 0 : index
    %4 = vector.load %arg3[%c0_4, %c0_5, %c0_6] : memref<1x32x256xf32, #tpu.memory_space<vmem>>, vector<1x32x256xf32>
    %5 = vector.shape_cast %4 : vector<1x32x256xf32> to vector<32x256xf32>
    %6 = arith.truncf %5 : vector<32x256xf32> to vector<32x256xbf16>
    %c32 = arith.constant 32 : index
    %c0_7 = arith.constant 0 : index
    %7 = vector.load %arg8[%c32, %c0_7] : memref<128x256xbf16, #tpu.memory_space<vmem>>, vector<32x256xbf16>
    tpu.vector_store %arg8[%c32, %c0_7], %6 {strides = array<i32>} : memref<128x256xbf16, #tpu.memory_space<vmem>>, vector<32x256xbf16>,
    %c0_8 = arith.constant 0 : index
    %c0_9 = arith.constant 0 : index
    %c0_10 = arith.constant 0 : index
    %8 = vector.load %arg4[%c0_8, %c0_9, %c0_10] : memref<1x64x256xf32, #tpu.memory_space<vmem>>, vector<1x64x256xf32>
    %9 = vector.shape_cast %8 : vector<1x64x256xf32> to vector<64x256xf32>
    %10 = arith.truncf %9 : vector<64x256xf32> to vector<64x256xbf16>
    %c64 = arith.constant 64 : index
    %c0_11 = arith.constant 0 : index
    %11 = vector.load %arg8[%c64, %c0_11] : memref<128x256xbf16, #tpu.memory_space<vmem>>, vector<64x256xbf16>
    tpu.vector_store %arg8[%c64, %c0_11], %10 {strides = array<i32>} : memref<128x256xbf16, #tpu.memory_space<vmem>>, vector<64x256xbf16>,
    %c0_12 = arith.constant 0 : index
    %c0_13 = arith.constant 0 : index
    %12 = vector.load %arg5[%c0_12, %c0_13] : memref<128x128xbf16, #tpu.memory_space<vmem>>, vector<128x128xbf16>
    %c0_14 = arith.constant 0 : index
    %c0_15 = arith.constant 0 : index
    %13 = vector.load %arg8[%c0_14, %c0_15] : memref<128x256xbf16, #tpu.memory_space<vmem>>, vector<128x256xbf16>
    %cst = arith.constant dense<0.000000e+00> : vector<128x256xf32>
    %14 = tpu.matmul %12, %13, %cst {dimension_numbers = #tpu.dot_dimension_numbers<[1], [0], [0], [1], [0, 0, 1, 1], [], []>} : vector<128x128xbf16>, vector<128x256xbf16>, vector<128x256xf32> -> vector<128x256xf32>
    %c0_16 = arith.constant 0 : index
    %c0_17 = arith.constant 0 : index
    %15 = vector.load %arg6[%c0_16, %c0_17] : memref<128x1xf32, #tpu.memory_space<vmem>>, vector<128x1xf32>
    %16 = vector.broadcast %15 : vector<128x1xf32> to vector<128x256xf32>
    %17 = arith.addf %14, %16 : vector<128x256xf32>
    %cst_18 = arith.constant 0.000000e+00 : f32
    %18 = vector.broadcast %cst_18 : f32 to vector<128x256xf32>
    %19 = arith.maximumf %17, %18 : vector<128x256xf32>
    %20 = arith.truncf %19 : vector<128x256xf32> to vector<128x256xbf16>
    %c0_19 = arith.constant 0 : index
    %c0_20 = arith.constant 0 : index
    %c0_21 = arith.constant 0 : index
    %21 = vector.load %arg7[%c0_19, %c0_20, %c0_21] : memref<1x128x256xbf16, #tpu.memory_space<vmem>>, vector<1x128x256xbf16>
    %22 = vector.shape_cast %21 : vector<1x128x256xbf16> to vector<128x256xbf16>
    %23 = vector.shape_cast %20 : vector<128x256xbf16> to vector<1x128x256xbf16>
    tpu.vector_store %arg7[%c0_19, %c0_20, %c0_21], %23 {strides = array<i32>} : memref<1x128x256xbf16, #tpu.memory_space<vmem>>, vector<1x128x256xbf16>,
    return
  }
  func.func @transform_0(%arg0: i32, %arg1: i32) -> (i32, i32, i32) {
    %c0_i32 = arith.constant 0 : i32
    %c0_i32_0 = arith.constant 0 : i32
    return %arg0, %c0_i32, %arg1 : i32, i32, i32
  }
  func.func @transform_1(%arg0: i32, %arg1: i32) -> (i32, i32, i32) {
    %c0_i32 = arith.constant 0 : i32
    %c0_i32_0 = arith.constant 0 : i32
    return %arg0, %c0_i32, %arg1 : i32, i32, i32
  }
  func.func @transform_2(%arg0: i32, %arg1: i32) -> (i32, i32, i32) {
    %c0_i32 = arith.constant 0 : i32
    %c0_i32_0 = arith.constant 0 : i32
    return %arg0, %c0_i32, %arg1 : i32, i32, i32
  }
  func.func @transform_3(%arg0: i32, %arg1: i32) -> (i32, i32) {
    %c0_i32 = arith.constant 0 : i32
    %c0_i32_0 = arith.constant 0 : i32
    %c0_i32_1 = arith.constant 0 : i32
    return %c0_i32, %c0_i32_0 : i32, i32
  }
  func.func @transform_4(%arg0: i32, %arg1: i32) -> (i32, i32) {
    %c0_i32 = arith.constant 0 : i32
    %c0_i32_0 = arith.constant 0 : i32
    %c0_i32_1 = arith.constant 0 : i32
    return %c0_i32, %c0_i32_0 : i32, i32
  }
  func.func @transform_5(%arg0: i32, %arg1: i32) -> (i32, i32, i32) {
    %c0_i32 = arith.constant 0 : i32
    %c0_i32_0 = arith.constant 0 : i32
    return %arg0, %c0_i32, %arg1 : i32, i32, i32
  }
}

</mosaic_0001>

<bundles_post_ra>
// kernel: tpu_custom_call.1
= control target key start
LH: loop header
LB: loop body
LE: loop exit
PB: predicated region body
PF: predicated region fallthrough
CT: control target
= control target key end

     0   :  { %s1809_s0 = inlined_call_operand.vmem [shape: f32[2,32,256], index: 0, kind: input, shape index: {}]   ;;  %s1810_s1 = inlined_call_operand.hbm [shape: f32[2,32,256], index: 1, kind: input, shape index: {}]   ;;  %s1811_s2 = inlined_call_operand.hbm [shape: f32[2,64,256], index: 2, kind: input, shape index: {}]   ;;  %s1812_s3 = inlined_call_operand.hbm [shape: bf16[128,128], index: 3, kind: input, shape index: {}]   ;;  %s1813_s4 = inlined_call_operand.vmem [shape: f32[128,1], index: 4, kind: input, shape index: {}]   ;;  %s1814_s5 = inlined_call_operand.hbm [shape: bf16[2,128,256], index: 5, kind: output, shape index: {}]  }
   0x1   :  { %1820 = sst [smem:[#allocation17_spill]] %s1810_s1 }
   0x2   :  { %1821 = sst [smem:[#allocation18_spill]] %s1812_s3 }
   0x3   :  { %10 = vsyncpa [#allocation4], 0 }
   0x4   :  { %12 = vsyncpa [#allocation4 + $0x1], 0 }
   0x5   :  { %13 = vsyncpa [#allocation7], 0 }
   0x6   :  { %15 = vsyncpa [#allocation7 + $0x1], 0 }
   0x7   :  { %16 = vsyncpa [#allocation5], 0 }
   0x8   :  { %18 = vsyncpa [#allocation5 + $0x1], 0  ;;  %s1411_s18 = smov 0   ;;  %s1413_s19 = smov 0  }
   0x9   :  { %s1415_s20 = smov 0   ;;  %s1417_s21 = smov 0  }
   0xa   :  { %s1419_s22 = smov 0   ;;  %s1421_s23 = smov 0  }
   0xb LB: > { %1822 = sst [smem:[#allocation14_spill]] %s1356_s20  ;;  %s1442_s24 = sadd.s32 4294967295, %s1368_s23   ;;  %s1368_s23 = sphi %s1421_s23, %s24_s23   ;;  %s1364_s22 = sphi %s1419_s22, %s1848_s22   ;;  %s1360_s21 = sphi %s1417_s21, %s1847_s21   ;;  %s1356_s20 = sphi %s1415_s20, %s1843_s20   ;;  %s1352_s19 = sphi %s1413_s19, %s1846_s19   ;;  %s1348_s18 = sphi %s1411_s18, %s1845_s18  }
   0xc   : > { %s1013_s25 = sadd.s32 4294967294, %s1368_s23   ;;  %p86_p0 = scmp.ne.s32.totalorder %s1352_s19, %s1348_s18 }
   0xd   : > { %p1815_p1 = scmp.eq.s32.totalorder %s1442_s24, 0  ;;  %p188_p3 = scmp.eq.s32.totalorder %s1013_s25, 1 }
   0xe   : > { %p1014_p5 = scmp.ge.s32.totalorder %s1368_s23, 1  ;;  %p195_p7 = scmp.lt.s32.totalorder %s1368_s23, 3 }
   0xf   : > { %p1451_p4 = por %p1815_p1, %p86_p0  ;;  %p1456_p6 = por %p188_p3, %p86_p0 }
  0x10   : > { %p1461_p8 = pnand %p1014_p5, %p195_p7  ;;  %s1370_s29 = smov [#allocation8]  }
  0x11   : > { %s1823_s26 = scalar_select %p1451_p4, 1, 0 }
  0x12   : > { %s1824_s27 = scalar_select %p1456_p6, 1, 0 }
  0x13   : > { %s1825_s28 = scalar_select %p1461_p8, 1, 0 }
  0x14   : > { %s207_s30 = sshll.u32 %s1370_s29, 4  ;;  %p1105_p9 = pneg %p1461_p8  ;;  %s208_s30 = int_to_ptr.vmem [resolvable:$true] %s207_s30 }
  0x15   : > { %s36_s7 = sadd.s32 1, %s1364_s22  ;;  %s1827_s3 = sld [smem:[#allocation18_spill]] }
  0x16   : > { %p1470_p11 = pnand %p1105_p9, %p1815_p1 }
  0x18   : > { %p1192_p13 = pneg %p1470_p11 }
  0x1b   : > { %s1190_s10 = scalar_lea.hbm %s1827_s3, 1024 }
  0x1c   : > { %p1191_p12 = scmp.ne.s32.totalorder %s1827_s3, %s1190_s10  ;;  %p1197_p5 = scmp.lt.u32.totalorder %s1190_s10, %s1827_s3 }
  0x1e   : > { %p1193_p0 = pnand %p1192_p13, %p1191_p12 }
  0x20   : > { %p1194_p3 = pneg %p1193_p0 }
  0x22   : > { %p1199_p7 = pnand %p1197_p5, %p1194_p3 }
  0x24   : > { %1202 = shalt.err (!%p1199_p7)
}
  0x25   : > { %s1203_s15 = scalar_lea.vmem %s208_s30, 1024  ;;  %p1211_p2 = scmp.lt.s32.totalorder %s208_s30, %s208_s30 }
  0x26   : > { %p1204_p9 = scmp.ne.s32.totalorder %s208_s30, %s1203_s15  ;;  %p1212_p6 = scmp.lt.s32.totalorder %s1203_s15, %s1203_s15 }
  0x28   : > { %p1206_p10 = pnand %p1204_p9, %p1192_p13  ;;  %p1213_p4 = por %p1212_p6, %p1211_p2 }
  0x2a   : > { %p1207_p1 = pneg %p1206_p10 }
  0x2c   : > { %p1214_p8 = pnand %p1213_p4, %p1207_p1 }
  0x2e   : > { %1217 = shalt.err (!%p1214_p8)
}
  0x2f   : > { %s1371_s16 = smov 64   ;;  %s1372_s17 = smov 4  }
  0x30   : > { %1108 = dma.hbm_to_vmem [thread:$0]  (!%p1470_p11), %s1827_s3, 1024, %s208_s30, [#allocation7], %s1371_s16, %s1371_s16, %s1372_s17  }
  0x31   : > { %p38_p1 = scmp.ge.s32.totalorder %s36_s7, 2  ;;  %s73_s8 = sadd.s32 1, %s1356_s20 }
  0x32   : > { %p80_p2 = scmp.ne.s32.totalorder %s1356_s20, %s1352_s19  ;;  %p81_p4 = scmp.eq.s32.totalorder %s1368_s23, 0 }
  0x33   : > { %s1850_s7 = smov (%p38_p1, %s36_s7), 0  ;;  %p1830_p8 = scmp.eq.s32.totalorder %s1442_s24, 1 }
  0x34   : > { %1828 = sst [smem:[#allocation15_spill]] %s1850_s7  ;;  %p1497_p6 = por %p81_p4, %p80_p2 }
  0x35   : > { %p1503_p10 = por %p1830_p8, %p80_p2  ;;  %s68_s10 = ssub.s32 %s1364_s22, %s1850_s7 }
  0x36   : > { %p1121_p11 = scmp.lt.s32.totalorder %s1368_s23, 2  ;;  %p71_p12 = scmp.eq.s32.totalorder %s68_s10, 0 }
  0x37   : > { %s1511_s30 = sand.u32 1, %s1356_s20   ;;  %s1059_s13 = sshll.u32 %s1364_s22, 10 }
  0x38   : > { %s1017_s11 = sshll.u32 %s1511_s30, 6  ;;  %s1833_s1 = sld [smem:[#allocation17_spill]] }
  0x39   : > { %s1515_s12 = scalar_select %p71_p12, %s1356_s20, %s73_s8  }
  0x3a   : > { %s241_s17 = scalar_lea.vmem [#allocation3], %s1017_s11  ;;  %p1527_p13 = pnand %p1121_p11, %p1497_p6 }
  0x3b   : > { %1832 = sst [smem:[#allocation16_spill]] %s1515_s12  ;;  %s250_s25 = sshll.u32 %s241_s17, 4  ;;  %s1523_s25 = int_to_ptr.vmem [resolvable:$true] %s250_s25 }
  0x3c   : > { %s238_s10 = scalar_lea.sflag [#allocation4], %s1511_s30  ;;  %p1220_p3 = pneg %p1527_p13 }
  0x3e   : > { %s1521_s16 = scalar_lea.hbm %s1833_s1, %s1059_s13  ;;  %s1223_s9 = scalar_lea.hbm %s1833_s1, 2048 }
  0x3f   : > { %s1218_s14 = scalar_lea.hbm %s1521_s16, 1024  ;;  %p1224_p9 = scmp.lt.u32.totalorder %s1521_s16, %s1833_s1 }
  0x40   : > { %p1219_p0 = scmp.ne.s32.totalorder %s1521_s16, %s1218_s14  ;;  %p1225_p1 = scmp.lt.u32.totalorder %s1223_s9, %s1218_s14 }
  0x41   : > { %p1227_p4 = scmp.lt.u32.totalorder %s1218_s14, %s1521_s16 }
  0x42   : > { %p1221_p5 = pnand %p1220_p3, %p1219_p0  ;;  %p1226_p2 = por %p1225_p1, %p1224_p9 }
  0x44   : > { %p1222_p7 = pneg %p1221_p5  ;;  %p1228_p6 = por %p1227_p4, %p1226_p2 }
  0x46   : > { %p1229_p8 = pnand %p1228_p6, %p1222_p7 }
  0x48   : > { %1232 = shalt.err (!%p1229_p8)
}
  0x49   : > { %s1233_s8 = scalar_lea.vmem %s1523_s25, 1024  ;;  %s1373_s11 = smov [#allocation3]  }
  0x4a   : > { %p1234_p11 = scmp.ne.s32.totalorder %s1523_s25, %s1233_s8  ;;  %s1238_s13 = sshll.u32 %s1373_s11, 4  ;;  %s1239_s13 = int_to_ptr.vmem [resolvable:$false] %s1238_s13 }
  0x4b   : > { %s1240_s15 = scalar_lea.vmem %s1239_s13, 2048  ;;  %p1241_p5 = scmp.lt.s32.totalorder %s1523_s25, %s1239_s13 }
  0x4c   : > { %p1236_p12 = pnand %p1234_p11, %p1220_p3  ;;  %p1242_p9 = scmp.lt.s32.totalorder %s1240_s15, %s1233_s8 }
  0x4e   : > { %p1237_p0 = pneg %p1236_p12  ;;  %p1243_p1 = por %p1242_p9, %p1241_p5 }
  0x50   : > { %p1244_p2 = pnand %p1243_p1, %p1237_p0 }
  0x52   : > { %1247 = shalt.err (!%p1244_p2)
}
  0x53   : > { %s1374_s14 = smov 256   ;;  %s1375_s9 = smov 16  }
  0x54   : > { %1112 = dma.hbm_to_vmem [thread:$0]  (!%p1527_p13), %s1521_s16, 1024, %s1523_s25, %s238_s10, %s1374_s14, %s1374_s14, %s1375_s9  }
  0x55   : > { %s1020_s8 = sshll.u32 %s1511_s30, 7  ;;  %s1060_s17 = sshll.u32 %s1364_s22, 11 }
  0x56   : > { %s1568_s15 = scalar_lea.hbm %s1811_s2, %s1060_s17  ;;  %s264_s1 = scalar_lea.vmem [#allocation6], %s1020_s8 }
  0x57   : > { %s273_s3 = sshll.u32 %s264_s1, 4  ;;  %s1835_s7 = sand.u32 1, %s1368_s23   ;;  %s1570_s3 = int_to_ptr.vmem [resolvable:$true] %s273_s3 }
  0x58   : > { %s1574_s12 = scalar_lea.sflag [#allocation7], %s1835_s7  ;;  %s1248_s20 = scalar_lea.hbm %s1568_s15, 2048 }
  0x59   : > { %p1249_p7 = scmp.ne.s32.totalorder %s1568_s15, %s1248_s20  ;;  %s1253_s25 = scalar_lea.hbm %s1811_s2, 4096 }
  0x5a   : > { %p1254_p8 = scmp.lt.u32.totalorder %s1568_s15, %s1811_s2  ;;  %p1255_p11 = scmp.lt.u32.totalorder %s1253_s25, %s1248_s20 }
  0x5b   : > { %p1251_p4 = pnand %p1249_p7, %p1220_p3  ;;  %p1257_p0 = scmp.lt.u32.totalorder %s1248_s20, %s1568_s15 }
  0x5c   : > { %p1256_p12 = por %p1255_p11, %p1254_p8 }
  0x5d   : > { %p1252_p6 = pneg %p1251_p4 }
  0x5e   : > { %p1258_p5 = por %p1257_p0, %p1256_p12 }
  0x60   : > { %p1259_p9 = pnand %p1258_p5, %p1252_p6 }
  0x62   : > { %1262 = shalt.err (!%p1259_p9)
}
  0x63   : > { %s1263_s1 = scalar_lea.vmem %s1570_s3, 2048  ;;  %s1376_s7 = smov [#allocation6]  }
  0x64   : > { %p1264_p1 = scmp.ne.s32.totalorder %s1570_s3, %s1263_s1  ;;  %s1268_s8 = sshll.u32 %s1376_s7, 4  ;;  %s1269_s8 = int_to_ptr.vmem [resolvable:$false] %s1268_s8 }
  0x65   : > { %s1270_s11 = scalar_lea.vmem %s1269_s8, 4096  ;;  %p1271_p4 = scmp.lt.s32.totalorder %s1570_s3, %s1269_s8 }
  0x66   : > { %p1266_p2 = pnand %p1264_p1, %p1220_p3  ;;  %p1272_p8 = scmp.lt.s32.totalorder %s1270_s11, %s1263_s1 }
  0x68   : > { %p1267_p7 = pneg %p1266_p2  ;;  %p1273_p11 = por %p1272_p8, %p1271_p4 }
  0x6a   : > { %p1274_p12 = pnand %p1273_p11, %p1267_p7 }
  0x6c   : > { %1277 = shalt.err (!%p1274_p12)
}
  0x6d   : > { %1115 = dma.hbm_to_vmem [thread:$0]  (!%p1527_p13), %s1568_s15, 2048, %s1570_s3, %s1574_s12, %s1374_s14, %s1374_s14, %s1375_s9  }
  0x6e   : > { %p1836_p3 = scmp.ne.s32.totalorder %s1825_s28, 0 }
  0x6f   : > { %s1606_s20 = sand.u32 (!%p1836_p3), 1, %s1352_s19   ;;  %p1837_p6 = scmp.ne.s32.totalorder (!%p1836_p3), %s1823_s26, 0 }
  0x70   : > { %285 = sbr.rel (%p1836_p3) target bundleno = 427 (0x1ab), region = 40  ;;  %s1024_s13 = sshll.u32 (!%p1836_p3), %s1606_s20, 6 }
  0x71   : > { %s288_s30 = scalar_lea.sflag (!%p1836_p3), [#allocation4], %s1606_s20  ;;  %s1610_s16 = scalar_lea.vmem (!%p1836_p3), [#allocation3], %s1024_s13 }
  0x77   : > { %1331 = dma.done.wait (%p1837_p6), %s288_s30, 1024  }
  0x78   : > { %1333 = vsyncadd (%p1837_p6), %s288_s30, 4294966272  ;;  %s296_s3 = sand.u32 1, %s1442_s24   ;;  %s1025_s28 = sshll.u32 %s1606_s20, 7 }
  0x79   : > { %s297_s12 = scalar_lea.sflag [#allocation7], %s296_s3  ;;  %s1620_s29 = scalar_lea.vmem [#allocation6], %s1025_s28 }
  0x7a   : > { %1335 = dma.done.wait (%p1837_p6), %s297_s12, 2048  }
  0x7b   : > { %1337 = vsyncadd (%p1837_p6), %s297_s12, 4294965248  ;;  %p1838_p13 = scmp.eq.s32.totalorder %s1442_s24, 0 }
  0x7d   : > { %1339 = dma.done.wait (%p1838_p13), [#allocation7], 1024   ;;  %p1839_p0 = pmov %p1838_p13 }
  0x7e   : > { %p346_p5 = scmp.lt.s32.totalorder %s1360_s21, 1  ;;  %v1377_v0 = vmov 0   ;;  %v376_v12 = vld [vmem:[%s1610_s16 + $0x8] sm:$0xff]  ;;  %v378_v13 = vld [vmem:[%s1610_s16 + $0x18] sm:$0xff]  ;;  %v375_v16 = vld [vmem:[%s1610_s16] sm:$0xff]  ;;  %s1378_s17 = smov [#allocation9]  }
  0x7f   : > { %1341 = vsyncadd (%p1839_p0), [#allocation7], 4294966272  ;;  %631 = vmatprep.mubr.bf16.mxu0 %v1377_v0  ;;  %671 = vmatprep.mubr.bf16.mxu1 %v1377_v0  ;;  %v384_v15 = vpack.c.bf16 %v378_v13, %v376_v12  ;;  %v377_v17 = vld [vmem:[%s1610_s16 + $0x10] sm:$0xff]  ;;  %v380_v18 = vld [vmem:[%s1610_s16 + $0x28] sm:$0xff]  ;;  %s1282_s1 = sshll.u32 %s1378_s17, 4  ;;  %s1283_s1 = int_to_ptr.vmem [resolvable:$false] %s1282_s1 }
  0x80   : > { %s347_s14 = scalar_select %p346_p5, %s1360_s21, 1  ;;  %1181 = vset.pattern.permute.xlu1 %v1377_v0  ;;  %1180 = vset.pattern.permute.xlu0 %v1377_v0  ;;  %v382_v19 = vld [vmem:[%s1610_s16 + $0x38] sm:$0xff]  ;;  %v383_v20 = vpack.c.bf16 %v377_v17, %v375_v16  ;;  %v379_v22 = vld [vmem:[%s1610_s16 + $0x20] sm:$0xff]  ;;  %v381_v23 = vld [vmem:[%s1610_s16 + $0x30] sm:$0xff] }
  0x81   : > { %v386_v21 = vpack.c.bf16 %v382_v19, %v380_v18  ;;  %v392_v24 = vld [vmem:[%s1620_s29 + $0x8] sm:$0xff]  ;;  %v394_v25 = vld [vmem:[%s1620_s29 + $0x18] sm:$0xff]  ;;  %v391_v26 = vld [vmem:[%s1620_s29] sm:$0xff]  ;;  %v385_v27 = vpack.c.bf16 %v381_v23, %v379_v22  ;;  %s1284_s7 = scalar_lea.vmem %s1283_s1, 4096 }
  0x82   : > { %s1061_s26 = sshll.u32 %s347_s14, 6  ;;  %v393_v28 = vld [vmem:[%s1620_s29 + $0x10] sm:$0xff]  ;;  %v408_v29 = vpack.c.bf16 %v394_v25, %v392_v24  ;;  %v396_v30 = vld [vmem:[%s1620_s29 + $0x28] sm:$0xff]  ;;  %v398_v31 = vld [vmem:[%s1620_s29 + $0x38] sm:$0xff] }
  0x83   : > { %s353_s24 = scalar_lea.vmem %s1809_s0, %s1061_s26  ;;  %v395_v32 = vld [vmem:[%s1620_s29 + $0x20] sm:$0xff]  ;;  %v407_v33 = vpack.c.bf16 %v393_v28, %v391_v26  ;;  %v397_v34 = vld [vmem:[%s1620_s29 + $0x30] sm:$0xff]  ;;  %v410_v35 = vpack.c.bf16 %v398_v31, %v396_v30  ;;  %v400_v36 = vld [vmem:[%s1620_s29 + $0x48] sm:$0xff] }
  0x84   : > { %v360_v1 = vld [vmem:[%s353_s24 + $0x8] sm:$0xff]  ;;  %v362_v2 = vld [vmem:[%s353_s24 + $0x18] sm:$0xff]  ;;  %v359_v3 = vld [vmem:[%s353_s24] sm:$0xff]  ;;  %v409_v40 = vpack.c.bf16 %v397_v34, %v395_v32 }
  0x85   : > { %v368_v4 = vpack.c.bf16 %v362_v2, %v360_v1  ;;  %v361_v5 = vld [vmem:[%s353_s24 + $0x10] sm:$0xff]  ;;  %v364_v6 = vld [vmem:[%s353_s24 + $0x28] sm:$0xff]  ;;  %v366_v7 = vld [vmem:[%s353_s24 + $0x38] sm:$0xff] }
  0x86   : > { %v367_v8 = vpack.c.bf16 %v361_v5, %v359_v3  ;;  %v370_v9 = vpack.c.bf16 %v366_v7, %v364_v6  ;;  %v363_v10 = vld [vmem:[%s353_s24 + $0x20] sm:$0xff]  ;;  %v365_v11 = vld [vmem:[%s353_s24 + $0x30] sm:$0xff]  ;;  %v402_v37 = vld [vmem:[%s1620_s29 + $0x58] sm:$0xff] }
  0x87   : > { %599 = vmatprep.subr.bf16.mxu0 %v368_v4  ;;  %1079 = vmatprep.subr.bf16.mxu1 %v368_v4  ;;  %v369_v14 = vpack.c.bf16 %v365_v11, %v363_v10  ;;  %v457_v38 = vld [vmem:[%s1813_s4 + $0x10] sm:$0xff]  ;;  %v455_v39 = vld [vmem:[%s1813_s4] sm:$0xff]  ;;  %v458_v41 = vld [vmem:[%s1813_s4 + $0x18] sm:$0xff]  ;;  %v412_v42 = vpack.c.bf16 %v402_v37, %v400_v36 }
  0x88   : > { %600 = vmatpush1.bf16.msra.mxu0 %v367_v8  ;;  %1087 = vmatpush1.bf16.msra.mxu1 %v367_v8  ;;  %v399_v43 = vld [vmem:[%s1620_s29 + $0x40] sm:$0xff]  ;;  %v401_v44 = vld [vmem:[%s1620_s29 + $0x50] sm:$0xff]  ;;  %v404_v45 = vld [vmem:[%s1620_s29 + $0x68] sm:$0xff] }
  0x89   : > { %601 = vmatprep.subr.bf16.mxu0 %v370_v9  ;;  %1080 = vmatprep.subr.bf16.mxu1 %v370_v9  ;;  %v406_v46 = vld [vmem:[%s1620_s29 + $0x78] sm:$0xff]  ;;  %v456_v47 = vld [vmem:[%s1813_s4 + $0x8] sm:$0xff]  ;;  %v411_v48 = vpack.c.bf16 %v401_v44, %v399_v43  ;;  %v403_v51 = vld [vmem:[%s1620_s29 + $0x60] sm:$0xff] }
  0x8a   : > { %483 = vperm.xlu1 %1181, %v457_v38   ;;  %473 = vperm.xlu0 %1180, %v455_v39   ;;  %v460_v49 = vld [vmem:[%s1813_s4 + $0x28] sm:$0xff]  ;;  %v414_v50 = vpack.c.bf16 %v406_v46, %v404_v45  ;;  %v405_v52 = vld [vmem:[%s1620_s29 + $0x70] sm:$0xff]  ;;  %v459_v53 = vld [vmem:[%s1813_s4 + $0x20] sm:$0xff]  ;;  %s1727_s29 = scalar_lea.vmem [#allocation9], %s1025_s28  ;;  %s1078_s28 = sshll.u32 %s1360_s21, 11 }
  0x8b   : > { %v413_v54 = vpack.c.bf16 %v405_v52, %v403_v51  ;;  %v462_v55 = vld [vmem:[%s1813_s4 + $0x38] sm:$0xff]  ;;  %v1182_v56 = vld [vmem:[#allocation8] sm:$0xff]   ;;  %v461_v58 = vld [vmem:[%s1813_s4 + $0x30] sm:$0xff]  ;;  %s872_s9 = sshll.u32 %s1727_s29, 4  ;;  %s1754_s25 = scalar_lea.hbm %s1814_s5, %s1078_s28  ;;  %s1756_s9 = int_to_ptr.vmem [resolvable:$true] %s872_s9 }
  0x8c   : > { %602 = vmatpush1.bf16.msra.mxu0 %v369_v14  ;;  %1088 = vmatpush1.bf16.msra.mxu1 %v369_v14  ;;  %v1183_v57 = vld [vmem:[#allocation8 + $0x20] sm:$0xff]   ;;  %v464_v59 = vld [vmem:[%s1813_s4 + $0x48] sm:$0xff]  ;;  %v466_v61 = vld [vmem:[%s1813_s4 + $0x58] sm:$0xff]  ;;  %s857_s21 = scalar_lea.sflag [#allocation5], %s1606_s20  ;;  %s1278_s10 = scalar_lea.vmem %s1756_s9, 2048 }
  0x8d   : > { %603 = vmatprep.subr.bf16.mxu0 %v384_v15  ;;  %1081 = vmatprep.subr.bf16.mxu1 %v384_v15  ;;  %v463_v60 = vld [vmem:[%s1813_s4 + $0x40] sm:$0xff]  ;;  %v1184_v62 = vld [vmem:[#allocation8 + $0x8] sm:$0xff]   ;;  %v465_v1 = vld [vmem:[%s1813_s4 + $0x50] sm:$0xff]  ;;  %p1279_p9 = scmp.ne.s32.totalorder %s1756_s9, %s1278_s10  ;;  %p1285_p7 = scmp.lt.s32.totalorder %s1756_s9, %s1283_s1 }
  0x8e   : > { %488 = vperm.xlu1 %1181, %v458_v41   ;;  %478 = vperm.xlu0 %1180, %v456_v47   ;;  %v1185_v63 = vld [vmem:[#allocation8 + $0x28] sm:$0xff]   ;;  %v467_v3 = vld [vmem:[%s1813_s4 + $0x60] sm:$0xff]  ;;  %v470_v4 = vld [vmem:[%s1813_s4 + $0x78] sm:$0xff]  ;;  %p1286_p4 = scmp.lt.s32.totalorder %s1284_s7, %s1278_s10 }
  0x8f   : > { %v468_v2 = vld [vmem:[%s1813_s4 + $0x68] sm:$0xff]  ;;  %v1186_v5 = vld [vmem:[#allocation8 + $0x10] sm:$0xff]   ;;  %v1188_v8 = vld [vmem:[#allocation8 + $0x18] sm:$0xff]   ;;  %p1280_p1 = pnand %p1279_p9, %p1503_p10 }
  0x90   : > { %604 = vmatpush1.bf16.msra.mxu0 %v383_v20  ;;  %1089 = vmatpush1.bf16.msra.mxu1 %v383_v20  ;;  %v1187_v6 = vld [vmem:[#allocation8 + $0x30] sm:$0xff]   ;;  %v1189_v9 = vld [vmem:[#allocation8 + $0x38] sm:$0xff]   ;;  %p1287_p8 = por %p1286_p4, %p1285_p7 }
  0x91   : > { %605 = vmatprep.subr.bf16.mxu0 %v386_v21  ;;  %1082 = vmatprep.subr.bf16.mxu1 %v386_v21  ;;  %v469_v7 = vld [vmem:[%s1813_s4 + $0x70] sm:$0xff]  ;;  %p1281_p2 = pneg %p1280_p1 }
  0x92   : > { %498 = vperm.xlu1 %1181, %v460_v49   ;;  %493 = vperm.xlu0 %1180, %v459_v53  }
  0x93   : > { %p1288_p11 = pnand %p1287_p8, %p1281_p2 }
  0x94   : > { %606 = vmatpush1.bf16.msra.mxu0 %v385_v27  ;;  %1090 = vmatpush1.bf16.msra.mxu1 %v385_v27 }
  0x95   : > { %607 = vmatprep.subr.bf16.mxu0 %v408_v29  ;;  %1083 = vmatprep.subr.bf16.mxu1 %v408_v29 }
  0x96   : > { %508 = vperm.xlu1 %1181, %v462_v55   ;;  %503 = vperm.xlu0 %1180, %v461_v58  }
  0x98   : > { %608 = vmatpush1.bf16.msra.mxu0 %v407_v33  ;;  %1091 = vmatpush1.bf16.msra.mxu1 %v407_v33 }
  0x99   : > { %609 = vmatprep.subr.bf16.mxu0 %v410_v35  ;;  %1084 = vmatprep.subr.bf16.mxu1 %v410_v35 }
  0x9a   : > { %518 = vperm.xlu1 %1181, %v464_v59   ;;  %513 = vperm.xlu0 %1180, %v463_v60  }
  0x9c   : > { %610 = vmatpush1.bf16.msra.mxu0 %v409_v40  ;;  %1092 = vmatpush1.bf16.msra.mxu1 %v409_v40 }
  0x9d   : > { %611 = vmatprep.subr.bf16.mxu0 %v412_v42  ;;  %1085 = vmatprep.subr.bf16.mxu1 %v412_v42 }
  0x9e   : > { %528 = vperm.xlu1 %1181, %v466_v61   ;;  %523 = vperm.xlu0 %1180, %v465_v1  }
  0xa0   : > { %612 = vmatpush1.bf16.msra.mxu0 %v411_v48  ;;  %1093 = vmatpush1.bf16.msra.mxu1 %v411_v48 }
  0xa1   : > { %613 = vmatprep.subr.bf16.mxu0 %v414_v50  ;;  %1086 = vmatprep.subr.bf16.mxu1 %v414_v50 }
  0xa2   : > { %538 = vperm.xlu1 %1181, %v468_v2   ;;  %533 = vperm.xlu0 %1180, %v467_v3  }
  0xa4   : > { %614 = vmatpush1.bf16.msra.mxu0 %v413_v54  ;;  %1094 = vmatpush1.bf16.msra.mxu1 %v413_v54 }
  0xa6   : > { %548 = vperm.xlu1 %1181, %v470_v4   ;;  %543 = vperm.xlu0 %1180, %v469_v7  }
  0xa7   : > { %632 = vmatmul.mubr.bf16.vlgmr.msra.gmra.mrb[0].mxu0 %v1182_v56  ;;  %672 = vmatmul.mubr.bf16.vlgmr.msra.gmra.mrb[0].mxu1 %v1183_v57 }
  0xa8   : > { %641 = vmatprep.mubr.bf16.mxu0 %v1377_v0  ;;  %681 = vmatprep.mubr.bf16.mxu1 %v1377_v0 }
  0xaf   : > { %642 = vmatmul.mubr.bf16.gmra.mrb[4].mxu0 %v1184_v62  ;;  %682 = vmatmul.mubr.bf16.gmra.mrb[4].mxu1 %v1185_v63 }
  0xb0   : > { %651 = vmatprep.mubr.bf16.mxu0 %v1377_v0  ;;  %691 = vmatprep.mubr.bf16.mxu1 %v1377_v0 }
  0xb7   : > { %652 = vmatmul.mubr.bf16.gmra.mrb[8].mxu0 %v1186_v5  ;;  %692 = vmatmul.mubr.bf16.gmra.mrb[8].mxu1 %v1187_v6 }
  0xb8   : > { %661 = vmatprep.mubr.bf16.mxu0 %v1377_v0  ;;  %701 = vmatprep.mubr.bf16.mxu1 %v1377_v0 }
  0xbf   : > { %662 = vmatmul.mubr.bf16.gmra.mrb[12].mxu0 %v1188_v8  ;;  %702 = vmatmul.mubr.bf16.gmra.mrb[12].mxu1 %v1189_v9 }
 0x109   : > { %v484_v10 = vpop.permute.xlu1 %483  ;;  %v474_v11 = vpop.permute.xlu0 %473 }
 0x10d   : > { %v489_v12 = vpop.permute.xlu1 %488  ;;  %v479_v13 = vpop.permute.xlu0 %478 }
 0x111   : > { %v1717_v14 = vpop.permute.xlu1 %498  ;;  %v1719_v15 = vpop.permute.xlu0 %493 }
 0x115   : > { %v1721_v16 = vpop.permute.xlu1 %508  ;;  %v1723_v17 = vpop.permute.xlu0 %503 }
 0x119   : > { %v519_v18 = vpop.permute.xlu1 %518  ;;  %v514_v19 = vpop.permute.xlu0 %513 }
 0x11d   : > { %v529_v45 = vpop.permute.xlu1 %528  ;;  %v524_v46 = vpop.permute.xlu0 %523 }
 0x17a   : > { %v633_v20 = vpop.f32.mrb[0].mxu0  ;;  %v673_v0 = vpop.f32.mrb[0].mxu1 }
 0x17b   : > { %v634_v21 = vadd.f32 %v633_v20, %v474_v11  ;;  %v674_v22 = vadd.f32 %v673_v0, %v514_v19  ;;  %v635_v23 = vpop.f32.mrb[1].mxu0  ;;  %v675_v24 = vpop.f32.mrb[1].mxu1 }
 0x17c   : > { %v636_v25 = vadd.f32 %v635_v23, %v474_v11  ;;  %v676_v26 = vadd.f32 %v675_v24, %v514_v19  ;;  %v637_v27 = vpop.f32.mrb[2].mxu0  ;;  %v677_v28 = vpop.f32.mrb[2].mxu1 }
 0x17d   : > { %v712_v29 = vmax.f32 %v634_v21, 0.0  ;;  %v728_v30 = vmax.f32 %v674_v22, 0.0  ;;  %v638_v31 = vadd.f32 %v637_v27, %v479_v13  ;;  %v678_v32 = vadd.f32 %v677_v28, %v519_v18  ;;  %v639_v33 = vpop.f32.mrb[3].mxu0  ;;  %v679_v34 = vpop.f32.mrb[3].mxu1 }
 0x17e   : > { %v713_v35 = vmax.f32 %v636_v25, 0.0  ;;  %v729_v36 = vmax.f32 %v676_v26, 0.0  ;;  %v640_v37 = vadd.f32 %v639_v33, %v479_v13  ;;  %v680_v38 = vadd.f32 %v679_v34, %v519_v18  ;;  %v539_v13 = vpop.permute.xlu1 %538  ;;  %v534_v18 = vpop.permute.xlu0 %533 }
 0x17f   : > { %v714_v39 = vmax.f32 %v638_v31, 0.0  ;;  %v730_v40 = vmax.f32 %v678_v32, 0.0 }
 0x180   : > { %v1062_v41 = vpack.c.bf16 %v713_v35, %v712_v29  ;;  %v1070_v42 = vpack.c.bf16 %v729_v36, %v728_v30  ;;  %v715_v43 = vmax.f32 %v640_v37, 0.0  ;;  %v731_v44 = vmax.f32 %v680_v38, 0.0 }
 0x182   : > { %840 = vst [vmem:[%s1727_s29] sm:$0xff] %v1062_v41  ;;  %848 = vst [vmem:[%s1727_s29 + $0x40] sm:$0xff] %v1070_v42  ;;  %v1063_v47 = vpack.c.bf16 %v715_v43, %v714_v39  ;;  %v1071_v48 = vpack.c.bf16 %v731_v44, %v730_v40  ;;  %v643_v49 = vpop.f32.mrb[4].mxu0  ;;  %v683_v50 = vpop.f32.mrb[4].mxu1 }
 0x183   : > { %v644_v51 = vadd.f32 %v643_v49, %v484_v10  ;;  %v684_v52 = vadd.f32 %v683_v50, %v524_v46  ;;  %v645_v53 = vpop.f32.mrb[5].mxu0  ;;  %v685_v54 = vpop.f32.mrb[5].mxu1 }
 0x184   : > { %841 = vst [vmem:[%s1727_s29 + $0x8] sm:$0xff] %v1063_v47  ;;  %849 = vst [vmem:[%s1727_s29 + $0x48] sm:$0xff] %v1071_v48  ;;  %v646_v55 = vadd.f32 %v645_v53, %v484_v10  ;;  %v686_v56 = vadd.f32 %v685_v54, %v524_v46  ;;  %v647_v57 = vpop.f32.mrb[6].mxu0  ;;  %v687_v58 = vpop.f32.mrb[6].mxu1 }
 0x185   : > { %v716_v59 = vmax.f32 %v644_v51, 0.0  ;;  %v732_v60 = vmax.f32 %v684_v52, 0.0  ;;  %v648_v61 = vadd.f32 %v647_v57, %v489_v12  ;;  %v688_v62 = vadd.f32 %v687_v58, %v529_v45  ;;  %v649_v63 = vpop.f32.mrb[7].mxu0  ;;  %v689_v1 = vpop.f32.mrb[7].mxu1 }
 0x186   : > { %v717_v2 = vmax.f32 %v646_v55, 0.0  ;;  %v733_v3 = vmax.f32 %v686_v56, 0.0  ;;  %v650_v4 = vadd.f32 %v649_v63, %v489_v12  ;;  %v690_v5 = vadd.f32 %v689_v1, %v529_v45  ;;  %v549_v44 = vpop.permute.xlu1 %548  ;;  %v544_v45 = vpop.permute.xlu0 %543 }
 0x187   : > { %v718_v6 = vmax.f32 %v648_v61, 0.0  ;;  %v734_v7 = vmax.f32 %v688_v62, 0.0 }
 0x188   : > { %v1064_v8 = vpack.c.bf16 %v717_v2, %v716_v59  ;;  %v1072_v9 = vpack.c.bf16 %v733_v3, %v732_v60  ;;  %v719_v10 = vmax.f32 %v650_v4, 0.0  ;;  %v735_v11 = vmax.f32 %v690_v5, 0.0 }
 0x18a   : > { %842 = vst [vmem:[%s1727_s29 + $0x10] sm:$0xff] %v1064_v8  ;;  %850 = vst [vmem:[%s1727_s29 + $0x50] sm:$0xff] %v1072_v9  ;;  %v1065_v19 = vpack.c.bf16 %v719_v10, %v718_v6  ;;  %v1073_v20 = vpack.c.bf16 %v735_v11, %v734_v7  ;;  %v653_v0 = vpop.f32.mrb[8].mxu0  ;;  %v693_v21 = vpop.f32.mrb[8].mxu1 }
 0x18b   : > { %v654_v22 = vadd.f32 %v653_v0, %v1719_v15  ;;  %v694_v12 = vadd.f32 %v693_v21, %v534_v18  ;;  %v655_v23 = vpop.f32.mrb[9].mxu0  ;;  %v695_v24 = vpop.f32.mrb[9].mxu1 }
 0x18c   : > { %843 = vst [vmem:[%s1727_s29 + $0x18] sm:$0xff] %v1065_v19  ;;  %851 = vst [vmem:[%s1727_s29 + $0x58] sm:$0xff] %v1073_v20  ;;  %v656_v25 = vadd.f32 %v655_v23, %v1719_v15  ;;  %v696_v26 = vadd.f32 %v695_v24, %v534_v18  ;;  %v657_v27 = vpop.f32.mrb[10].mxu0  ;;  %v697_v28 = vpop.f32.mrb[10].mxu1 }
 0x18d   : > { %v720_v29 = vmax.f32 %v654_v22, 0.0  ;;  %v736_v30 = vmax.f32 %v694_v12, 0.0  ;;  %v658_v31 = vadd.f32 %v657_v27, %v1717_v14  ;;  %v698_v32 = vadd.f32 %v697_v28, %v539_v13  ;;  %v659_v33 = vpop.f32.mrb[11].mxu0  ;;  %v699_v34 = vpop.f32.mrb[11].mxu1 }
 0x18e   : > { %v721_v35 = vmax.f32 %v656_v25, 0.0  ;;  %v737_v36 = vmax.f32 %v696_v26, 0.0  ;;  %v660_v37 = vadd.f32 %v659_v33, %v1717_v14  ;;  %v700_v38 = vadd.f32 %v699_v34, %v539_v13 }
 0x18f   : > { %v722_v39 = vmax.f32 %v658_v31, 0.0  ;;  %v738_v40 = vmax.f32 %v698_v32, 0.0 }
 0x190   : > { %v1066_v15 = vpack.c.bf16 %v721_v35, %v720_v29  ;;  %v1074_v41 = vpack.c.bf16 %v737_v36, %v736_v30  ;;  %v723_v42 = vmax.f32 %v660_v37, 0.0  ;;  %v739_v43 = vmax.f32 %v700_v38, 0.0 }
 0x192   : > { %844 = vst [vmem:[%s1727_s29 + $0x20] sm:$0xff] %v1066_v15  ;;  %852 = vst [vmem:[%s1727_s29 + $0x60] sm:$0xff] %v1074_v41  ;;  %v1067_v46 = vpack.c.bf16 %v723_v42, %v722_v39  ;;  %v1075_v47 = vpack.c.bf16 %v739_v43, %v738_v40  ;;  %v663_v48 = vpop.f32.mrb[12].mxu0  ;;  %v703_v49 = vpop.f32.mrb[12].mxu1 }
 0x193   : > { %v664_v50 = vadd.f32 %v663_v48, %v1723_v17  ;;  %v704_v14 = vadd.f32 %v703_v49, %v544_v45  ;;  %v665_v51 = vpop.f32.mrb[13].mxu0  ;;  %v705_v52 = vpop.f32.mrb[13].mxu1 }
 0x194   : > { %845 = vst [vmem:[%s1727_s29 + $0x28] sm:$0xff] %v1067_v46  ;;  %853 = vst [vmem:[%s1727_s29 + $0x68] sm:$0xff] %v1075_v47  ;;  %v666_v53 = vadd.f32 %v665_v51, %v1723_v17  ;;  %v706_v54 = vadd.f32 %v705_v52, %v544_v45  ;;  %v667_v55 = vpop.f32.mrb[14].mxu0  ;;  %v707_v56 = vpop.f32.mrb[14].mxu1 }
 0x195   : > { %v724_v57 = vmax.f32 %v664_v50, 0.0  ;;  %v740_v58 = vmax.f32 %v704_v14, 0.0  ;;  %v668_v59 = vadd.f32 %v667_v55, %v1721_v16  ;;  %v708_v60 = vadd.f32 %v707_v56, %v549_v44  ;;  %v669_v61 = vpop.f32.mrb[15].mxu0  ;;  %v709_v62 = vpop.f32.mrb[15].mxu1 }
 0x196   : > { %v725_v63 = vmax.f32 %v666_v53, 0.0  ;;  %v741_v1 = vmax.f32 %v706_v54, 0.0  ;;  %v670_v2 = vadd.f32 %v669_v61, %v1721_v16  ;;  %v710_v3 = vadd.f32 %v709_v62, %v549_v44 }
 0x197   : > { %v726_v17 = vmax.f32 %v668_v59, 0.0  ;;  %v742_v4 = vmax.f32 %v708_v60, 0.0 }
 0x198   : > { %v1068_v5 = vpack.c.bf16 %v725_v63, %v724_v57  ;;  %v1076_v6 = vpack.c.bf16 %v741_v1, %v740_v58  ;;  %v727_v7 = vmax.f32 %v670_v2, 0.0  ;;  %v743_v8 = vmax.f32 %v710_v3, 0.0 }
 0x19a   : > { %846 = vst [vmem:[%s1727_s29 + $0x30] sm:$0xff] %v1068_v5  ;;  %854 = vst [vmem:[%s1727_s29 + $0x70] sm:$0xff] %v1076_v6  ;;  %v1069_v16 = vpack.c.bf16 %v727_v7, %v726_v17  ;;  %v1077_v9 = vpack.c.bf16 %v743_v8, %v742_v4 }
 0x19c   : > { %847 = vst [vmem:[%s1727_s29 + $0x38] sm:$0xff] %v1069_v16  ;;  %855 = vst [vmem:[%s1727_s29 + $0x78] sm:$0xff] %v1077_v9 }
 0x19d   : > { %1291 = shalt.err (!%p1288_p11)
}
 0x19e   : > { %s1292_s8 = scalar_lea.hbm %s1754_s25, 2048  ;;  %s1296_s30 = scalar_lea.hbm %s1814_s5, 4096 }
 0x19f   : > { %p1293_p12 = scmp.ne.s32.totalorder %s1754_s25, %s1292_s8  ;;  %p1297_p13 = scmp.lt.u32.totalorder %s1754_s25, %s1814_s5 }
 0x1a0   : > { %p1298_p0 = scmp.lt.u32.totalorder %s1296_s30, %s1292_s8  ;;  %p1300_p9 = scmp.lt.u32.totalorder %s1292_s8, %s1754_s25 }
 0x1a1   : > { %p1294_p3 = pnand %p1293_p12, %p1503_p10 }
 0x1a2   : > { %p1299_p5 = por %p1298_p0, %p1297_p13 }
 0x1a3   : > { %p1295_p6 = pneg %p1294_p3 }
 0x1a4   : > { %p1301_p1 = por %p1300_p9, %p1299_p5 }
 0x1a6   : > { %p1302_p2 = pnand %p1301_p1, %p1295_p6 }
 0x1a8   : > { %1305 = shalt.err (!%p1302_p2)
}
 0x1a9   : > { %s1379_s12 = smov 128   ;;  %s1380_s14 = smov 8  }
 0x1aa   : > { %1103 = dma.vmem_to_hbm [thread:$0]  (%p1503_p10), %s1756_s9, 2048, %s1754_s25, %s857_s21, %s1379_s12, %s1379_s12, %s1380_s14  }
 0x1ab PF: > { %s887_s26 = sand.u32 1, %s1348_s18   ;;  %p1840_p7 = scmp.ne.s32.totalorder %s1824_s27, 0 }
 0x1ac   : > { %p1841_p4 = scmp.ge.s32.totalorder %s1368_s23, 2  ;;  %s888_s29 = scalar_lea.sflag [#allocation5], %s887_s26 }
 0x1ae   : > { %p1117_p8 = pnand %p1841_p4, %p1840_p7 }
 0x1b0   : > { %1343 = dma.done.wait (!%p1117_p8), %s888_s29, 2048  }
 0x1b1   : > { %1345 = vsyncadd (!%p1117_p8), %s888_s29, 4294965248  ;;  %s24_s23 = sadd.s32 1, %s1368_s23   ;;  %s1842_s28 = sld [smem:[#allocation14_spill]] }
 0x1b2   : > { %p21_p11 = scmp.ge.s32.totalorder %s24_s23, 4   ;;  %s1843_s20 = sld [smem:[#allocation16_spill]] }
 0x1b3   : > { %s1844_s6 = sld [smem:[#allocation15_spill]]  ;;  %s1845_s18 = smov %s1352_s19 }
 0x1b4   : > { %s1847_s21 = smov %s1364_s22  ;;  %23 = sbr.rel (!%p21_p11) target bundleno = 11 (0xb), region = 105 }
 0x1b7   : > { %s1846_s19 = smov %s1842_s28 }
 0x1b9   : > { %s1848_s22 = smov %s1844_s6 }
 0x1bb   :  { %893 = vsyncpa [#allocation4], 1 }
 0x1bc   :  { %895 = vsyncpa [#allocation4 + $0x1], 1 }
 0x1bd   :  { %896 = vsyncpa [#allocation7], 1 }
 0x1be   :  { %898 = vsyncpa [#allocation7 + $0x1], 1 }
 0x1bf   :  { %899 = vsyncpa [#allocation5], 1 }
 0x1c0   :  { %901 = vsyncpa [#allocation5 + $0x1], 1 }

</bundles_post_ra>
